<compile_context>
chip_gen: v7x
topology: tpu7x:2x2x1
jax: 0.10.0
libtpu: 0.0.40
codegen_flags: <defaults>
</compile_context>

<pallas_src>
import jax
import jax.numpy as jnp
from jax.experimental import pallas as pl
from jax.experimental.pallas import tpu as pltpu

# ---------------- static configuration ----------------
B = 2            # batch
C_IN = 8         # in_channels (depthwise channels)
F_OUT = 16       # out_channels (output pointwise head)
F_SKIP = 16      # skip_channels (skip pointwise head)
F_TOTAL = F_OUT + F_SKIP
T = 32           # input sequence length
K = 3            # kernel_size
STRIDE = 1
DILATION = 2
# nn.Conv1d with padding=0 (this module never pads):
T_OUT = (T - DILATION * (K - 1) - 1) // STRIDE + 1   # == 28


# ---------------- Pallas kernel (single invocation, whole batch, NCL layout) ----------------
def dsconv_kernel(x_ref, wdw_ref, bdw_ref, wpw_ref, bpw_ref, alpha_ref,
                  out_ref, skip_ref):
    # x_ref:     (B, C_IN, T)        input, native NCL layout (C on sublanes, T on lanes)
    # wdw_ref:   (C_IN, K)           depthwise taps (per-channel scalars)
    # bdw_ref:   (C_IN, 1)           depthwise bias
    # wpw_ref:   (F_TOTAL, C_IN)     fused [output | skip] pointwise weight
    # bpw_ref:   (F_TOTAL, 1)        fused [output | skip] pointwise bias
    # alpha_ref: (1, 1) in SMEM      PReLU scalar parameter
    # out_ref:   (B, F_OUT, T_OUT)   output head (NCL)
    # skip_ref:  (B, F_SKIP, T_OUT)  skip head  (NCL)
    wdw = wdw_ref[...]
    bdw = bdw_ref[...]
    wpw = wpw_ref[...]
    bpw = bpw_ref[...]
    alpha = alpha_ref[0, 0]           # scalar read from SMEM

    for b in range(B):                # B is tiny & static -> fully unrolled
        x_b = x_ref[b]                # (C_IN, T)

        # Depthwise dilated conv (groups == channels): per-channel scale of lane-rotated
        # copies of x.  Positive-shift roll == np.roll; wrapped columns land at t >= T_OUT
        # and are never stored.  Bias folded into the first tap (no zero-init vreg).
        dw = x_b * wdw[:, 0:1] + bdw                              # (C_IN, T)
        for k in range(1, K):         # K static, unrolled
            tap = pltpu.roll(x_b, T - k * DILATION, axis=1)       # x[:, t + k*DILATION]
            dw = dw + tap * wdw[:, k:k + 1]

        # PReLU (scalar parameter, PyTorch default num_parameters=1)
        dw = jnp.maximum(dw, 0.0) + alpha * jnp.minimum(dw, 0.0)

        # TODO(synk): channel norm (cLN/gLN) omitted — get_layer_norm not in the spec
        #             (norm=None configuration).

        # Fused output+skip pointwise 1x1 conv: one MXU matmul per batch element,
        # result already in NCL orientation (channels on sublanes, time on lanes).
        y = jnp.dot(wpw, dw, preferred_element_type=jnp.float32) + bpw   # (F_TOTAL, T)
        out_ref[b] = y[:F_OUT, :T_OUT]
        skip_ref[b] = y[F_OUT:, :T_OUT]


# ---------------- one-time parameter fusion (NOT per forward call) ----------------
def prepare_params(w_dw, b_dw, alpha, w_out, b_out, w_skip, b_skip):
    """Fuse PyTorch Conv1d parameters into the kernel's layouts, once."""
    wdw = w_dw[:, 0, :].astype(jnp.float32)                               # (C_IN, K)
    bdw = b_dw.reshape(C_IN, 1).astype(jnp.float32)                       # (C_IN, 1)
    # concat the two 1x1 heads along the output-channel (sublane) axis — no transposes
    wpw = jnp.concatenate([w_out[:, :, 0], w_skip[:, :, 0]], axis=0).astype(jnp.float32)  # (F_TOTAL, C_IN)
    bpw = jnp.concatenate([b_out, b_skip]).reshape(F_TOTAL, 1).astype(jnp.float32)
    alpha = jnp.asarray(alpha, jnp.float32).reshape(1, 1)
    return wdw, bdw, wpw, bpw, alpha


# ---------------- forward: a single pallas_call, no surrounding XLA ops ----------------
@jax.jit
def depthwise_separable_conv1d(x_bct, wdw, bdw, wpw, bpw, alpha):
    """x_bct: (B, C_IN, T) PyTorch NCL layout, f32. Returns (output, skip) in NCL."""
    return pl.pallas_call(
        dsconv_kernel,
        out_shape=(
            jax.ShapeDtypeStruct((B, F_OUT, T_OUT), jnp.float32),
            jax.ShapeDtypeStruct((B, F_SKIP, T_OUT), jnp.float32),
        ),
        in_specs=[
            pl.BlockSpec(memory_space=pltpu.MemorySpace.VMEM),   # x
            pl.BlockSpec(memory_space=pltpu.MemorySpace.VMEM),   # wdw
            pl.BlockSpec(memory_space=pltpu.MemorySpace.VMEM),   # bdw
            pl.BlockSpec(memory_space=pltpu.MemorySpace.VMEM),   # wpw
            pl.BlockSpec(memory_space=pltpu.MemorySpace.VMEM),   # bpw
            pl.BlockSpec(memory_space=pltpu.MemorySpace.SMEM),   # alpha scalar
        ],
        out_specs=(
            pl.BlockSpec(memory_space=pltpu.MemorySpace.VMEM),
            pl.BlockSpec(memory_space=pltpu.MemorySpace.VMEM),
        ),
        # no grid: whole problem resident in VMEM, one invocation (v5e/v6e have 1 TC).
    )(x_bct, wdw, bdw, wpw, bpw, alpha)


# ---------------- plain-JAX reference (for verification only) ----------------
def reference(x_bct, w_dw, b_dw, alpha, w_out, b_out, w_skip, b_skip):
    x = x_bct.astype(jnp.float32)                                        # (B, C, T)
    dw = jnp.zeros((B, C_IN, T_OUT), jnp.float32)
    for k in range(K):
        dw = dw + x[:, :, k * DILATION:k * DILATION + T_OUT] * w_dw[:, 0, k][None, :, None]
    dw = dw + b_dw[None, :, None]
    dw = jnp.maximum(dw, 0.0) + alpha * jnp.minimum(dw, 0.0)             # PReLU
    out = jnp.einsum('bct,fc->bft', dw, w_out[:, :, 0]) + b_out[None, :, None]
    skip = jnp.einsum('bct,sc->bst', dw, w_skip[:, :, 0]) + b_skip[None, :, None]
    return out, skip


if __name__ == "__main__":
    key = jax.random.PRNGKey(0)
    k_x, k_wd, k_bd, k_wo, k_bo, k_ws, k_bs = jax.random.split(key, 7)

    # Deterministic synthetic parameters (PyTorch Conv1d weight layouts).
    x = jax.random.normal(k_x, (B, C_IN, T), jnp.float32)                # NCL input
    w_dw = 0.1 * jax.random.normal(k_wd, (C_IN, 1, K), jnp.float32)      # depthwise: (C, 1, K)
    b_dw = 0.1 * jax.random.normal(k_bd, (C_IN,), jnp.float32)
    alpha = jnp.float32(0.25)                                            # nn.PReLU() default init
    w_out = 0.1 * jax.random.normal(k_wo, (F_OUT, C_IN, 1), jnp.float32)
    b_out = 0.1 * jax.random.normal(k_bo, (F_OUT,), jnp.float32)
    w_skip = 0.1 * jax.random.normal(k_ws, (F_SKIP, C_IN, 1), jnp.float32)
    b_skip = 0.1 * jax.random.normal(k_bs, (F_SKIP,), jnp.float32)

    # Fuse weights once (parameter-setup time), then the forward is one pallas_call.
    wdw, bdw, wpw, bpw, alpha_p = prepare_params(w_dw, b_dw, alpha,
                                                 w_out, b_out, w_skip, b_skip)

    out, skip = depthwise_separable_conv1d(x, wdw, bdw, wpw, bpw, alpha_p)
    out = jax.block_until_ready(out)
    skip = jax.block_until_ready(skip)

    ref_out, ref_skip = reference(x, w_dw, b_dw, alpha, w_out, b_out, w_skip, b_skip)
    assert out.shape == (B, F_OUT, T_OUT) and skip.shape == (B, F_SKIP, T_OUT)
    assert jnp.allclose(out, ref_out, atol=1e-5, rtol=1e-5)
    assert jnp.allclose(skip, ref_skip, atol=1e-5, rtol=1e-5)

    print("KERNEL_OK")
</pallas_src>

<mosaic_0001>
module attributes {stable_mosaic.version = 11 : i64} {
  func.func @dsconv_kernel(%arg0: memref<2x8x32xf32, #tpu.memory_space<vmem>>, %arg1: memref<8x3xf32, #tpu.memory_space<vmem>>, %arg2: memref<8x1xf32, #tpu.memory_space<vmem>>, %arg3: memref<32x8xf32, #tpu.memory_space<vmem>>, %arg4: memref<32x1xf32, #tpu.memory_space<vmem>>, %arg5: memref<1x1xf32, #tpu.memory_space<smem>>, %arg6: memref<2x16x28xf32, #tpu.memory_space<vmem>>, %arg7: memref<2x16x28xf32, #tpu.memory_space<vmem>>) attributes {dimension_semantics = [], scalar_prefetch = 0 : i64, scratch_operands = 0 : i64, tpu.core_type = #tpu.core_type<tc>} {
    %c0 = arith.constant 0 : index
    %c0_0 = arith.constant 0 : index
    %0 = vector.load %arg1[%c0, %c0_0] : memref<8x3xf32, #tpu.memory_space<vmem>>, vector<8x3xf32>
    %c0_1 = arith.constant 0 : index
    %c0_2 = arith.constant 0 : index
    %1 = vector.load %arg2[%c0_1, %c0_2] : memref<8x1xf32, #tpu.memory_space<vmem>>, vector<8x1xf32>
    %c0_3 = arith.constant 0 : index
    %c0_4 = arith.constant 0 : index
    %2 = vector.load %arg3[%c0_3, %c0_4] : memref<32x8xf32, #tpu.memory_space<vmem>>, vector<32x8xf32>
    %c0_5 = arith.constant 0 : index
    %c0_6 = arith.constant 0 : index
    %3 = vector.load %arg4[%c0_5, %c0_6] : memref<32x1xf32, #tpu.memory_space<vmem>>, vector<32x1xf32>
    %c0_7 = arith.constant 0 : index
    %c0_8 = arith.constant 0 : index
    %4 = memref.load %arg5[%c0_7, %c0_8] : memref<1x1xf32, #tpu.memory_space<smem>>
    %c0_9 = arith.constant 0 : index
    %c0_10 = arith.constant 0 : index
    %c0_11 = arith.constant 0 : index
    %5 = vector.load %arg0[%c0_9, %c0_10, %c0_11] : memref<2x8x32xf32, #tpu.memory_space<vmem>>, vector<1x8x32xf32>
    %6 = vector.shape_cast %5 : vector<1x8x32xf32> to vector<8x32xf32>
    %7 = vector.extract_strided_slice %0 {offsets = [0, 0], sizes = [8, 1], strides = [1, 1]} : vector<8x3xf32> to vector<8x1xf32>
    %8 = vector.broadcast %7 : vector<8x1xf32> to vector<8x32xf32>
    %9 = arith.mulf %6, %8 : vector<8x32xf32>
    %10 = vector.broadcast %1 : vector<8x1xf32> to vector<8x32xf32>
    %11 = arith.addf %9, %10 : vector<8x32xf32>
    %c30_i32 = arith.constant 30 : i32
    %12 = tpu.dynamic_rotate %6 by %c30_i32 dim 1 : vector<8x32xf32>, i32 -> vector<8x32xf32>
    %13 = vector.extract_strided_slice %0 {offsets = [0, 1], sizes = [8, 1], strides = [1, 1]} : vector<8x3xf32> to vector<8x1xf32>
    %14 = vector.broadcast %13 : vector<8x1xf32> to vector<8x32xf32>
    %15 = arith.mulf %12, %14 : vector<8x32xf32>
    %16 = arith.addf %11, %15 : vector<8x32xf32>
    %c28_i32 = arith.constant 28 : i32
    %17 = tpu.dynamic_rotate %6 by %c28_i32 dim 1 : vector<8x32xf32>, i32 -> vector<8x32xf32>
    %18 = vector.extract_strided_slice %0 {offsets = [0, 2], sizes = [8, 1], strides = [1, 1]} : vector<8x3xf32> to vector<8x1xf32>
    %19 = vector.broadcast %18 : vector<8x1xf32> to vector<8x32xf32>
    %20 = arith.mulf %17, %19 : vector<8x32xf32>
    %21 = arith.addf %16, %20 : vector<8x32xf32>
    %cst = arith.constant 0.000000e+00 : f32
    %22 = vector.broadcast %cst : f32 to vector<8x32xf32>
    %23 = arith.maximumf %21, %22 : vector<8x32xf32>
    %cst_12 = arith.constant 0.000000e+00 : f32
    %24 = vector.broadcast %cst_12 : f32 to vector<8x32xf32>
    %25 = arith.minimumf %21, %24 : vector<8x32xf32>
    %26 = vector.broadcast %4 : f32 to vector<8x32xf32>
    %27 = arith.mulf %26, %25 : vector<8x32xf32>
    %28 = arith.addf %23, %27 : vector<8x32xf32>
    %cst_13 = arith.constant dense<0.000000e+00> : vector<32x32xf32>
    %29 = tpu.matmul %2, %28, %cst_13 {dimension_numbers = #tpu.dot_dimension_numbers<[1], [0], [0], [1], [0, 0, 1, 1], [], []>} : vector<32x8xf32>, vector<8x32xf32>, vector<32x32xf32> -> vector<32x32xf32>
    %30 = vector.broadcast %3 : vector<32x1xf32> to vector<32x32xf32>
    %31 = arith.addf %29, %30 : vector<32x32xf32>
    %32 = vector.extract_strided_slice %31 {offsets = [0, 0], sizes = [16, 28], strides = [1, 1]} : vector<32x32xf32> to vector<16x28xf32>
    %c0_14 = arith.constant 0 : index
    %c0_15 = arith.constant 0 : index
    %c0_16 = arith.constant 0 : index
    %33 = vector.load %arg6[%c0_14, %c0_15, %c0_16] : memref<2x16x28xf32, #tpu.memory_space<vmem>>, vector<1x16x28xf32>
    %34 = vector.shape_cast %33 : vector<1x16x28xf32> to vector<16x28xf32>
    %35 = vector.shape_cast %32 : vector<16x28xf32> to vector<1x16x28xf32>
    tpu.vector_store %arg6[%c0_14, %c0_15, %c0_16], %35 {strides = array<i32>} : memref<2x16x28xf32, #tpu.memory_space<vmem>>, vector<1x16x28xf32>,
    %36 = vector.extract_strided_slice %31 {offsets = [16, 0], sizes = [16, 28], strides = [1, 1]} : vector<32x32xf32> to vector<16x28xf32>
    %c0_17 = arith.constant 0 : index
    %c0_18 = arith.constant 0 : index
    %c0_19 = arith.constant 0 : index
    %37 = vector.load %arg7[%c0_17, %c0_18, %c0_19] : memref<2x16x28xf32, #tpu.memory_space<vmem>>, vector<1x16x28xf32>
    %38 = vector.shape_cast %37 : vector<1x16x28xf32> to vector<16x28xf32>
    %39 = vector.shape_cast %36 : vector<16x28xf32> to vector<1x16x28xf32>
    tpu.vector_store %arg7[%c0_17, %c0_18, %c0_19], %39 {strides = array<i32>} : memref<2x16x28xf32, #tpu.memory_space<vmem>>, vector<1x16x28xf32>,
    %c1 = arith.constant 1 : index
    %c0_20 = arith.constant 0 : index
    %c0_21 = arith.constant 0 : index
    %40 = vector.load %arg0[%c1, %c0_20, %c0_21] : memref<2x8x32xf32, #tpu.memory_space<vmem>>, vector<1x8x32xf32>
    %41 = vector.shape_cast %40 : vector<1x8x32xf32> to vector<8x32xf32>
    %42 = vector.extract_strided_slice %0 {offsets = [0, 0], sizes = [8, 1], strides = [1, 1]} : vector<8x3xf32> to vector<8x1xf32>
    %43 = vector.broadcast %42 : vector<8x1xf32> to vector<8x32xf32>
    %44 = arith.mulf %41, %43 : vector<8x32xf32>
    %45 = vector.broadcast %1 : vector<8x1xf32> to vector<8x32xf32>
    %46 = arith.addf %44, %45 : vector<8x32xf32>
    %c30_i32_22 = arith.constant 30 : i32
    %47 = tpu.dynamic_rotate %41 by %c30_i32_22 dim 1 : vector<8x32xf32>, i32 -> vector<8x32xf32>
    %48 = vector.extract_strided_slice %0 {offsets = [0, 1], sizes = [8, 1], strides = [1, 1]} : vector<8x3xf32> to vector<8x1xf32>
    %49 = vector.broadcast %48 : vector<8x1xf32> to vector<8x32xf32>
    %50 = arith.mulf %47, %49 : vector<8x32xf32>
    %51 = arith.addf %46, %50 : vector<8x32xf32>
    %c28_i32_23 = arith.constant 28 : i32
    %52 = tpu.dynamic_rotate %41 by %c28_i32_23 dim 1 : vector<8x32xf32>, i32 -> vector<8x32xf32>
    %53 = vector.extract_strided_slice %0 {offsets = [0, 2], sizes = [8, 1], strides = [1, 1]} : vector<8x3xf32> to vector<8x1xf32>
    %54 = vector.broadcast %53 : vector<8x1xf32> to vector<8x32xf32>
    %55 = arith.mulf %52, %54 : vector<8x32xf32>
    %56 = arith.addf %51, %55 : vector<8x32xf32>
    %cst_24 = arith.constant 0.000000e+00 : f32
    %57 = vector.broadcast %cst_24 : f32 to vector<8x32xf32>
    %58 = arith.maximumf %56, %57 : vector<8x32xf32>
    %cst_25 = arith.constant 0.000000e+00 : f32
    %59 = vector.broadcast %cst_25 : f32 to vector<8x32xf32>
    %60 = arith.minimumf %56, %59 : vector<8x32xf32>
    %61 = vector.broadcast %4 : f32 to vector<8x32xf32>
    %62 = arith.mulf %61, %60 : vector<8x32xf32>
    %63 = arith.addf %58, %62 : vector<8x32xf32>
    %cst_26 = arith.constant dense<0.000000e+00> : vector<32x32xf32>
    %64 = tpu.matmul %2, %63, %cst_26 {dimension_numbers = #tpu.dot_dimension_numbers<[1], [0], [0], [1], [0, 0, 1, 1], [], []>} : vector<32x8xf32>, vector<8x32xf32>, vector<32x32xf32> -> vector<32x32xf32>
    %65 = vector.broadcast %3 : vector<32x1xf32> to vector<32x32xf32>
    %66 = arith.addf %64, %65 : vector<32x32xf32>
    %67 = vector.extract_strided_slice %66 {offsets = [0, 0], sizes = [16, 28], strides = [1, 1]} : vector<32x32xf32> to vector<16x28xf32>
    %c1_27 = arith.constant 1 : index
    %c0_28 = arith.constant 0 : index
    %c0_29 = arith.constant 0 : index
    %68 = vector.load %arg6[%c1_27, %c0_28, %c0_29] : memref<2x16x28xf32, #tpu.memory_space<vmem>>, vector<1x16x28xf32>
    %69 = vector.shape_cast %68 : vector<1x16x28xf32> to vector<16x28xf32>
    %70 = vector.shape_cast %67 : vector<16x28xf32> to vector<1x16x28xf32>
    tpu.vector_store %arg6[%c1_27, %c0_28, %c0_29], %70 {strides = array<i32>} : memref<2x16x28xf32, #tpu.memory_space<vmem>>, vector<1x16x28xf32>,
    %71 = vector.extract_strided_slice %66 {offsets = [16, 0], sizes = [16, 28], strides = [1, 1]} : vector<32x32xf32> to vector<16x28xf32>
    %c1_30 = arith.constant 1 : index
    %c0_31 = arith.constant 0 : index
    %c0_32 = arith.constant 0 : index
    %72 = vector.load %arg7[%c1_30, %c0_31, %c0_32] : memref<2x16x28xf32, #tpu.memory_space<vmem>>, vector<1x16x28xf32>
    %73 = vector.shape_cast %72 : vector<1x16x28xf32> to vector<16x28xf32>
    %74 = vector.shape_cast %71 : vector<16x28xf32> to vector<1x16x28xf32>
    tpu.vector_store %arg7[%c1_30, %c0_31, %c0_32], %74 {strides = array<i32>} : memref<2x16x28xf32, #tpu.memory_space<vmem>>, vector<1x16x28xf32>,
    return
  }
}

</mosaic_0001>

<bundles_post_ra>
// kernel: depthwise_separable_conv1d.1
= control target key start
LH: loop header
LB: loop body
LE: loop exit
PB: predicated region body
PF: predicated region fallthrough
CT: control target
= control target key end

     0   :  { %14 = vsyncpa [#allocation4], 0  ;;  %s453_s28 = smov 32   ;;  %v454_v2 = vmov 1   ;;  %s593_s0 = inlined_call_operand.vmem [shape: f32[2,8,32], index: 0, kind: input, shape index: {}]   ;;  %s594_s1 = inlined_call_operand.vmem [shape: f32[8,3], index: 1, kind: input, shape index: {}]   ;;  %s595_s2 = inlined_call_operand.vmem [shape: f32[8,1], index: 2, kind: input, shape index: {}]   ;;  %s596_s3 = inlined_call_operand.vmem [shape: f32[32,8], index: 3, kind: input, shape index: {}]   ;;  %s597_s4 = inlined_call_operand.vmem [shape: f32[32,1], index: 4, kind: input, shape index: {}]   ;;  %s598_s5 = inlined_call_operand.<no memory space> [shape: f32[1,1], index: 5, kind: input, shape index: {}]   ;;  %s599_s6 = inlined_call_operand.hbm [shape: f32[2,16,28], index: 6, kind: output, shape index: {0}]   ;;  %s600_s7 = inlined_call_operand.hbm [shape: f32[2,16,28], index: 7, kind: output, shape index: {1}]  }
   0x1   :  { %v39_v0 = vld [vmem:[%s593_s0] sm:$0xff]  ;;  %401 = vset.pattern.permute.xlu1 %v454_v2 }
   0x2   :  { %v28_v1 = vld [vmem:[%s594_s1] sm:$0xff]  ;;  %53 = vrot.lane.b32.xlu0 %v39_v0, %s453_s28 }
   0x3   :  { %15 = vsyncpa [#allocation6], 0  ;;  %v360_v3 = vld [vmem:[%s593_s0 + $0x8] sm:$0xff]  ;;  %60 = vperm.xlu1 %401, %v28_v1   ;;  %v455_v4 = vmov 0   ;;  %v456_v5 = vmov 2   ;;  %vm52_vm0 = vcmask 1047808   ;;  %v81_v37 = vstv %s598_s5 }
   0x4   :  { %403 = vset.pattern.permute.xlu0 %v455_v4  ;;  %v29_v10 = vld [vmem:[%s595_s2] sm:$0xff]  ;;  %vm104_vm1 = vcmask 64512   ;;  %s457_s10 = smov 126   ;;  %s458_s2 = smov 124   ;;  %v36_v23 = vld [vmem:[%s597_s4 + $0x10] sm:$0xff]  ;;  %v35_v24 = vld [vmem:[%s597_s4 + $0x8] sm:$0xff] }
   0x5   :  { %v30_v16 = vld [vmem:[%s596_s3] sm:$0xff]  ;;  %v37_v25 = vld [vmem:[%s597_s4 + $0x18] sm:$0xff]  ;;  %v31_v46 = vld [vmem:[%s596_s3 + $0x8] sm:$0xff]  ;;  %vm202_vm2 = vcmask 228352   ;;  %s459_s25 = smov [#allocation3]  }
   0x6   :  { %211 = vrot.lane.b32.xlu0 %v360_v3, %s453_s28  ;;  %377 = vmatprep.mubr.msk.f32.mxu0 %vm104_vm1, %v30_v16  ;;  %v34_v21 = vld [vmem:[%s597_s4] sm:$0xff]  ;;  %v32_v49 = vld [vmem:[%s596_s3 + $0x10] sm:$0xff]  ;;  %v33_v51 = vld [vmem:[%s596_s3 + $0x18] sm:$0xff]  ;;  %s329_s26 = sshll.u32 %s459_s25, 4  ;;  %s460_s3 = smov [#allocation5]   ;;  %s556_s26 = int_to_ptr.vmem [resolvable:$true] %s329_s26 }
   0x7   :  { %402 = vset.pattern.permute.xlu1 %v456_v5  ;;  %385 = vmatprep.mubr.msk.f32.mxu1 %vm104_vm1, %v30_v16  ;;  %s341_s27 = sshll.u32 %s460_s3, 4  ;;  %p410_p1 = scmp.lt.s32.totalorder %s556_s26, %s556_s26  ;;  %s342_s27 = int_to_ptr.vmem [resolvable:$true] %s341_s27 }
   0x8   :  { %70 = vperm.xlu1 %402, %v28_v1  }
   0xc   :  { %404 = vset.pattern.permute.xlu1 %v455_v4 }
  0x74   :  { %v54_v6 = vpop.permute.xlu0 %53 }
  0x75   :  { %v55_v7 = vsel %vm52_vm0, %v54_v6, %v39_v0 }
  0x76   :  { %56 = vrot.lane.b32.xlu0 %v55_v7, %s453_s28 }
  0x78   :  { %v212_v8 = vpop.permute.xlu0 %211 }
  0x79   :  { %v213_v9 = vsel %vm52_vm0, %v212_v8, %v360_v3 }
  0x7a   :  { %214 = vrot.lane.b32.xlu1 %v213_v9, %s453_s28  ;;  %42 = vperm.xlu0 %403, %v28_v1   ;;  %s405_s28 = scalar_lea.vmem %s556_s26, 512 }
  0x7b   :  { %p406_p0 = scmp.ne.s32.totalorder %s556_s26, %s405_s28  ;;  %p411_p2 = scmp.lt.s32.totalorder %s405_s28, %s405_s28 }
  0x7d   :  { %p412_p3 = por %p411_p2, %p410_p1 }
  0x7e   :  { %48 = vperm.xlu1 %404, %v29_v10  }
  0x7f   :  { %p413_p4 = pnand %p412_p3, %p406_p0 }
  0x82   :  { %v61_v11 = vpop.permute.xlu1 %60 }
  0x87   :  { %v71_v12 = vpop.permute.xlu1 %70 }
  0xe8   :  { %v57_v13 = vpop.permute.xlu0 %56 }
  0xe9   :  { %v58_v14 = vsel %vm52_vm0, %v57_v13, %v39_v0 }
  0xea   :  { %v63_v15 = vmul.f32 %v61_v11, %v58_v14  ;;  %v73_v19 = vmul.f32 %v71_v12, %v58_v14 }
  0xec   :  { %65 = vrot.lane.b32.xlu1 %v63_v15, %s457_s10  ;;  %v215_v17 = vpop.permute.xlu1 %214 }
  0xed   :  { %v216_v18 = vsel %vm52_vm0, %v215_v17, %v360_v3 }
  0xee   :  { %v217_v20 = vmul.f32 %v216_v18, %v61_v11  ;;  %v223_v22 = vmul.f32 %v216_v18, %v71_v12 }
  0xf0   :  { %75 = vrot.lane.b32.xlu1 %v73_v19, %s458_s2  ;;  %219 = vrot.lane.b32.xlu0 %v217_v20, %s457_s10 }
  0xf4   :  { %86 = vperm.xlu1 %404, %v34_v21   ;;  %225 = vrot.lane.b32.xlu0 %v223_v22, %s458_s2 }
  0xf8   :  { %96 = vperm.xlu1 %404, %v36_v23   ;;  %91 = vperm.xlu0 %403, %v35_v24  }
  0xf9   :  { %v43_v26 = vpop.permute.xlu0 %42 }
  0xfa   :  { %v45_v28 = vmul.f32 %v43_v26, %v39_v0  ;;  %v209_v31 = vmul.f32 %v360_v3, %v43_v26 }
  0xfc   :  { %101 = vperm.xlu0 %403, %v37_v25  }
  0xfd   :  { %v49_v27 = vpop.permute.xlu1 %48 }
  0xfe   :  { %v51_v29 = vadd.f32 %v49_v27, %v45_v28  ;;  %v210_v35 = vadd.f32 %v209_v31, %v49_v27 }
 0x15e   :  { %v66_v30 = vpop.permute.xlu1 %65 }
 0x15f   :  { %v68_v32 = vadd.f32 %v66_v30, %v51_v29 }
 0x162   :  { %v220_v33 = vpop.permute.xlu0 %219  ;;  %v76_v34 = vpop.permute.xlu1 %75 }
 0x163   :  { %v78_v36 = vadd.f32 %v76_v34, %v68_v32  ;;  %v222_v38 = vadd.f32 %v220_v33, %v210_v35 }
 0x165   :  { %v80_v39 = vmin.f32 %v78_v36, 0.0  ;;  %v79_v41 = vmax.f32 %v78_v36, 0.0 }
 0x166   :  { %v226_v40 = vpop.permute.xlu0 %225 }
 0x167   :  { %v228_v42 = vadd.f32 %v226_v40, %v222_v38  ;;  %v82_v43 = vmul.f32 %v81_v37, %v80_v39 }
 0x169   :  { %v230_v44 = vmin.f32 %v228_v42, 0.0  ;;  %v83_v45 = vadd.f32 %v82_v43, %v79_v41  ;;  %v229_v47 = vmax.f32 %v228_v42, 0.0 }
 0x16b   :  { %375 = vmatprep.subr.mxu0 %v83_v45  ;;  %v231_v48 = vmul.f32 %v230_v44, %v81_v37 }
 0x16c   :  { %376 = vmatpush3.msra.mxu0 %v83_v45 }
 0x16d   :  { %378 = vmatmul.mubr.msk.f32.vlgmr.msra.gmra.mrb[0].mxu0 %vm104_vm1, %v31_v46  ;;  %v232_v50 = vadd.f32 %v231_v48, %v229_v47 }
 0x16e   :  { %380 = vmatprep.mubr.msk.f32.mxu0 %vm104_vm1, %v32_v49 }
 0x16f   :  { %383 = vmatprep.subr.mxu1 %v232_v50 }
 0x170   :  { %384 = vmatpush3.msra.mxu1 %v232_v50 }
 0x171   :  { %381 = vmatmul.mubr.msk.f32.gmra.mrb[2].mxu0 %vm104_vm1, %v33_v51  ;;  %386 = vmatmul.mubr.msk.f32.vlgmr.msra.gmra.mrb[0].mxu1 %vm104_vm1, %v31_v46 }
 0x172   :  { %388 = vmatprep.mubr.msk.f32.mxu1 %vm104_vm1, %v32_v49 }
 0x173   :  { %v87_v52 = vpop.permute.xlu1 %86 }
 0x175   :  { %389 = vmatmul.mubr.msk.f32.gmra.mrb[2].mxu1 %vm104_vm1, %v33_v51 }
 0x177   :  { %v92_v53 = vpop.permute.xlu0 %91  ;;  %v97_v58 = vpop.permute.xlu1 %96 }
 0x17b   :  { %v102_v59 = vpop.permute.xlu0 %101 }
 0x240   :  { %v379_v54 = vpop.f32.mrb[0].mxu0 }
 0x241   :  { %v189_v55 = vadd.f32 %v379_v54, %v92_v53  ;;  %v183_v56 = vpop.f32.mrb[1].mxu0 }
 0x242   :  { %v184_v57 = vadd.f32 %v183_v56, %v87_v52 }
 0x243   :  { %204 = vst.msk [vmem:[#allocation3 + $0x8] sm:$0xff] %vm202_vm2, %v189_v55 }
 0x244   :  { %203 = vst.msk [vmem:[#allocation3] sm:$0xff] %vm202_vm2, %v184_v57  ;;  %v382_v60 = vpop.f32.mrb[2].mxu0  ;;  %v387_v61 = vpop.f32.mrb[0].mxu1 }
 0x245   :  { %v199_v62 = vadd.f32 %v382_v60, %v102_v59  ;;  %v305_v63 = vadd.f32 %v387_v61, %v92_v53  ;;  %v193_v0 = vpop.f32.mrb[3].mxu0  ;;  %v299_v1 = vpop.f32.mrb[1].mxu1 }
 0x246   :  { %v194_v2 = vadd.f32 %v193_v0, %v97_v58  ;;  %v300_v3 = vadd.f32 %v299_v1, %v87_v52 }
 0x247   :  { %206 = vst.msk [vmem:[#allocation5 + $0x8] sm:$0xff] %vm202_vm2, %v199_v62  ;;  %320 = vst.msk [vmem:[#allocation3 + $0x18] sm:$0xff] %vm202_vm2, %v305_v63 }
 0x248   :  { %205 = vst.msk [vmem:[#allocation5] sm:$0xff] %vm202_vm2, %v194_v2  ;;  %319 = vst.msk [vmem:[#allocation3 + $0x10] sm:$0xff] %vm202_vm2, %v300_v3  ;;  %v390_v4 = vpop.f32.mrb[2].mxu1 }
 0x249   :  { %v315_v5 = vadd.f32 %v390_v4, %v102_v59  ;;  %v309_v6 = vpop.f32.mrb[3].mxu1 }
 0x24a   :  { %416 = shalt.err (!%p413_p4)
}
 0x24b   :  { %s417_s1 = scalar_lea.hbm %s599_s6, 512 }
 0x24c   :  { %p418_p5 = scmp.ne.s32.totalorder %s599_s6, %s417_s1  ;;  %p421_p6 = scmp.lt.u32.totalorder %s417_s1, %s599_s6 }
 0x24e   :  { %p423_p7 = pnand %p421_p6, %p418_p5 }
 0x250   :  { %426 = shalt.err (!%p423_p7)
}
 0x251   :  { %s461_s2 = smov 128   ;;  %s462_s11 = smov 8   ;;  %v310_v7 = vadd.f32 %v309_v6, %v97_v58  ;;  %323 = vst.msk [vmem:[#allocation5 + $0x18] sm:$0xff] %vm202_vm2, %v315_v5 }
 0x252   :  { %335 = dma.vmem_to_hbm [thread:$0]  %s556_s26, 512, %s599_s6, [#allocation4], %s461_s2, %s461_s2, %s462_s11  }
 0x253   :  { %322 = vst.msk [vmem:[#allocation5 + $0x10] sm:$0xff] %vm202_vm2, %v310_v7  ;;  %s427_s14 = scalar_lea.vmem %s342_s27, 512  ;;  %p432_p9 = scmp.lt.s32.totalorder %s342_s27, %s342_s27 }
 0x254   :  { %p428_p8 = scmp.ne.s32.totalorder %s342_s27, %s427_s14  ;;  %p433_p10 = scmp.lt.s32.totalorder %s427_s14, %s427_s14 }
 0x256   :  { %p434_p11 = por %p433_p10, %p432_p9 }
 0x258   :  { %p435_p12 = pnand %p434_p11, %p428_p8 }
 0x25a   :  { %438 = shalt.err (!%p435_p12)
}
 0x25b   :  { %s439_s17 = scalar_lea.hbm %s600_s7, 512 }
 0x25c   :  { %p440_p13 = scmp.ne.s32.totalorder %s600_s7, %s439_s17  ;;  %p443_p0 = scmp.lt.u32.totalorder %s439_s17, %s600_s7 }
 0x25e   :  { %p445_p1 = pnand %p443_p0, %p440_p13 }
 0x260   :  { %448 = shalt.err (!%p445_p1)
}
 0x261   :  { %347 = dma.vmem_to_hbm [thread:$0]  %s342_s27, 512, %s600_s7, [#allocation6], %s461_s2, %s461_s2, %s462_s11  }
 0x262   :  { %449 = dma.done.wait [#allocation4], 512  }
 0x263   :  { %450 = vsyncadd [#allocation4], 4294966784 }
 0x264   :  { %451 = dma.done.wait [#allocation6], 512  }
 0x265   :  { %452 = vsyncadd [#allocation6], 4294966784 }
 0x266   :  { %354 = vsyncpa [#allocation4], 1 }
 0x267   :  { %355 = vsyncpa [#allocation6], 1 }

</bundles_post_ra>
